<compile_context>
chip_gen: v7x
topology: tpu7x:2x2x1
jax: 0.10.0
libtpu: 0.0.40
codegen_flags: <defaults>
</compile_context>

<pallas_src>
import functools

import jax
import jax.numpy as jnp
from jax.experimental import pallas as pl
from jax.experimental.pallas import tpu as pltpu


# ---------------------------------------------------------------------------
# Kernels
# ---------------------------------------------------------------------------

def _rowwise_kernel(x_ref, w_ref, b_ref, o_ref):
    """General path (D >= 128 or D not dividing 128): one logical row per sublane row.

    x_ref: (TB, D) VMEM tile (streamed, double-buffered by the BlockSpec pipeline)
    w_ref: (1, D)  VMEM      (constant-indexed -> resident across grid steps)
    b_ref: (1,)    SMEM scalar
    o_ref: (TB, 1) VMEM output tile
    """
    x = x_ref[...].astype(jnp.float32)            # cast inputs BEFORE the multiply
    w = w_ref[...].astype(jnp.float32)
    y = jnp.sum(x * w, axis=-1, keepdims=True)    # VPU multiply + XLU lane reduce
    o_ref[...] = (y + b_ref[0]).astype(o_ref.dtype)
    # TODO(synk): for very large D (>~8K) add a trailing "arbitrary" K grid axis
    # with a (TB, 1) f32 VMEM accumulator (init at k==0, write at k==last).
    # TODO(synk): optional lane-dense (1, TB) output store (low single-digit %
    # for large D on v5e/v6e; the packed path below already covers small D).


def _packed_kernel(x_ref, w_ref, b_ref, o_ref, *, dim, pack):
    """Lane-packed path for D < 128: `pack` = 128 // D logical rows per lane row.

    x_ref: (TR, 128) VMEM tile of packed rows (packed row r = logical rows r*pack .. r*pack+pack-1)
    w_ref: (1, 128)  VMEM weight tiled `pack` times (resident)
    b_ref: (1,)      SMEM scalar
    o_ref: (TR, pack) output tile; o[r, j] = prediction for logical row r*pack + j
    """
    x = x_ref[...].astype(jnp.float32)
    w = w_ref[...].astype(jnp.float32)
    prod = x * w                                  # VPU; every lane is useful work
    # Segmented lane reduce: sum each group of `dim` consecutive lanes (XLU).
    segs = [
        jnp.sum(prod[:, j * dim:(j + 1) * dim], axis=-1, keepdims=True)
        for j in range(pack)
    ]
    y = jnp.concatenate(segs, axis=-1)            # (TR, pack), lane-denser output
    o_ref[...] = (y + b_ref[0]).astype(o_ref.dtype)


# ---------------------------------------------------------------------------
# Tiling policy
# ---------------------------------------------------------------------------

def _vmem_budget():
    """Return (vmem_limit_bytes, per_block_budget_bytes) for this chip."""
    physical = 64 * 1024 * 1024                   # conservative default: v7x-sized VMEM
    try:
        info = pltpu.get_tpu_info()
        physical = int(getattr(info, "vmem_capacity_bytes", physical)) or physical
    except Exception:
        pass
    # 64 MiB scoped limit on 128-MiB parts (v5e/v6e), 48 MiB on 64-MiB parts (v7x).
    vmem_limit = min(64 * 1024 * 1024, (physical * 3) // 4)
    # Per-x-block budget: 2 double-buffered x tiles + one possibly-materialized
    # f32 product temporary + weight/output buffers + headroom  =>  ~6 slots.
    per_block = min(8 * 1024 * 1024, vmem_limit // 6)
    return vmem_limit, per_block


def _choose_rows(num_rows, row_vmem_bytes, per_block_budget):
    """Rows per block: cap by VMEM bytes (not a row count), keep sublane
    alignment, and keep >=2 (ideally >=4) grid steps for the v7x megacore."""
    row_vmem_bytes = max(1, row_vmem_bytes)
    tr = max(8, (per_block_budget // row_vmem_bytes) // 8 * 8)
    # Guarantee multiple grid steps (so the "parallel" batch axis can be split
    # across both v7x TensorCores and the DMA pipeline can overlap), but never
    # shrink a block below ~2 MiB — the measured DMA-efficiency knee.
    min_block_bytes = 2 * 1024 * 1024
    for steps in (4, 2):
        cand = (num_rows // steps) // 8 * 8
        if cand >= 8 and cand * row_vmem_bytes >= min_block_bytes:
            tr = min(tr, cand)
            break
    if num_rows <= tr:
        return num_rows                           # full extent is always a legal block
    return tr


# ---------------------------------------------------------------------------
# Forward wrapper (torch.nn.Linear(input_dim, 1) semantics)
# ---------------------------------------------------------------------------

def linear_forward(x, weight, bias):
    """y = x @ weight.T + bias.

    x:      (B, D) float32 / bfloat16
    weight: (1, D)  (PyTorch layout: (out_features=1, in_features=D))
    bias:   (1,)
    returns (B, 1) in x.dtype
    """
    B, D = x.shape
    w = jnp.asarray(weight).reshape(1, D)
    b = jnp.asarray(bias).reshape(1).astype(jnp.float32)
    out_dtype = x.dtype
    itemsize = jnp.dtype(x.dtype).itemsize

    vmem_limit, per_block = _vmem_budget()
    cparams = pltpu.CompilerParams(
        dimension_semantics=("parallel",),        # megacore-shardable on v7x
        vmem_limit_bytes=vmem_limit,
    )
    cost = pl.CostEstimate(
        flops=2 * B * D,
        transcendentals=0,
        bytes_accessed=B * D * itemsize + D * itemsize + B * itemsize,
    )

    pack = 128 // D if (D < 128 and 128 % D == 0) else 1
    if pack >= 2 and D >= 8 and B % pack == 0:
        # ---------------- lane-packed path (D divides 128) ----------------
        R = B // pack
        x_packed = x.reshape(R, 128)              # metadata-only reshape (contiguous)
        w_tiled = jnp.tile(w, (1, pack))          # (1, 128)

        TR = _choose_rows(R, 128 * 4, per_block)  # 512 B of VMEM per packed row (f32)
        grid = (pl.cdiv(R, TR),)
        y = pl.pallas_call(
            functools.partial(_packed_kernel, dim=D, pack=pack),
            out_shape=jax.ShapeDtypeStruct((R, pack), out_dtype),
            grid_spec=pltpu.PrefetchScalarGridSpec(
                num_scalar_prefetch=0,
                grid=grid,
                in_specs=[
                    pl.BlockSpec((TR, 128), lambda i: (i, 0)),     # streamed x
                    pl.BlockSpec((1, 128), lambda i: (0, 0)),      # resident weight
                    pl.BlockSpec(memory_space=pltpu.MemorySpace.SMEM),  # bias scalar
                ],
                out_specs=pl.BlockSpec((TR, pack), lambda i: (i, 0)),
            ),
            compiler_params=cparams,
            cost_estimate=cost,
        )(x_packed, w_tiled, b)
        return y.reshape(B, 1)

    # ------------------- general row-wise path -------------------
    # VMEM bytes per row are lane-padded (last dim rounds up to 128 lanes).
    row_bytes = pl.cdiv(D, 128) * 128 * 4
    TB = _choose_rows(B, row_bytes, per_block)
    grid = (pl.cdiv(B, TB),)
    return pl.pallas_call(
        _rowwise_kernel,
        out_shape=jax.ShapeDtypeStruct((B, 1), out_dtype),
        grid_spec=pltpu.PrefetchScalarGridSpec(
            num_scalar_prefetch=0,
            grid=grid,
            in_specs=[
                pl.BlockSpec((TB, D), lambda i: (i, 0)),           # streamed x
                pl.BlockSpec((1, D), lambda i: (0, 0)),            # resident weight
                pl.BlockSpec(memory_space=pltpu.MemorySpace.SMEM),  # bias scalar
            ],
            out_specs=pl.BlockSpec((TB, 1), lambda i: (i, 0)),
        ),
        compiler_params=cparams,
        cost_estimate=cost,
    )(x, w, b)


# ---------------------------------------------------------------------------
# Demo / self-check
# ---------------------------------------------------------------------------

if __name__ == "__main__":
    key = jax.random.PRNGKey(0)
    kx, kw, kb, kx2, kw2, kb2 = jax.random.split(key, 6)

    # Case 1: small D (exercises the D<128 lane-packed path; matches the
    # module's intended Linear(input_dim, 1) usage).
    batch, input_dim = 64, 32
    bound = 1.0 / jnp.sqrt(jnp.float32(input_dim))
    weight = jax.random.uniform(kw, (1, input_dim), jnp.float32, -bound, bound)
    bias = jax.random.uniform(kb, (1,), jnp.float32, -bound, bound)
    x = jax.random.normal(kx, (batch, input_dim), jnp.float32)

    y = jax.block_until_ready(linear_forward(x, weight, bias))
    y_ref = jnp.sum(x * weight, axis=-1, keepdims=True) + bias  # exact f32 reference
    assert y.shape == (batch, 1)
    assert jnp.allclose(y, y_ref, atol=1e-4, rtol=1e-4)

    # Case 2: D >= 128 (exercises the general row-wise path).
    batch2, input_dim2 = 64, 256
    bound2 = 1.0 / jnp.sqrt(jnp.float32(input_dim2))
    weight2 = jax.random.uniform(kw2, (1, input_dim2), jnp.float32, -bound2, bound2)
    bias2 = jax.random.uniform(kb2, (1,), jnp.float32, -bound2, bound2)
    x2 = jax.random.normal(kx2, (batch2, input_dim2), jnp.float32)

    y2 = jax.block_until_ready(linear_forward(x2, weight2, bias2))
    y2_ref = jnp.sum(x2 * weight2, axis=-1, keepdims=True) + bias2
    assert y2.shape == (batch2, 1)
    assert jnp.allclose(y2, y2_ref, atol=1e-4, rtol=1e-4)

    print("KERNEL_OK")
</pallas_src>

<mosaic_0001>
module attributes {stable_mosaic.version = 11 : i64} {
  func.func @_packed_kernel(%arg0: i32, %arg1: memref<16x128xf32, #tpu.memory_space<vmem>>, %arg2: memref<1x128xf32, #tpu.memory_space<vmem>>, %arg3: memref<1xf32, #tpu.memory_space<smem>>, %arg4: memref<16x4xf32, #tpu.memory_space<vmem>>) attributes {dimension_semantics = [#tpu.dimension_semantics<parallel>], iteration_bounds = array<i64: 1>, scalar_prefetch = 0 : i64, scratch_operands = 0 : i64, tpu.core_type = #tpu.core_type<tc>, window_params = [{transform_indices = @transform_0, window_bounds = array<i64: 16, 128>}, {pipeline_mode = #tpu.pipeline_mode<synchronous>, transform_indices = @transform_1, window_bounds = array<i64: 1, 128>}, {transform_indices = @transform_2, window_bounds = array<i64: 1>}, {transform_indices = @transform_3, window_bounds = array<i64: 16, 4>}]} {
    %c0 = arith.constant 0 : index
    %c0_0 = arith.constant 0 : index
    %0 = vector.load %arg1[%c0, %c0_0] : memref<16x128xf32, #tpu.memory_space<vmem>>, vector<16x128xf32>
    %c0_1 = arith.constant 0 : index
    %c0_2 = arith.constant 0 : index
    %1 = vector.load %arg2[%c0_1, %c0_2] : memref<1x128xf32, #tpu.memory_space<vmem>>, vector<1x128xf32>
    %2 = vector.broadcast %1 : vector<1x128xf32> to vector<16x128xf32>
    %3 = arith.mulf %0, %2 : vector<16x128xf32>
    %4 = vector.extract_strided_slice %3 {offsets = [0, 0], sizes = [16, 32], strides = [1, 1]} : vector<16x128xf32> to vector<16x32xf32>
    %cst = arith.constant dense<0.000000e+00> : vector<16xf32>
    %5 = vector.multi_reduction <add>, %4, %cst [1] : vector<16x32xf32> to vector<16xf32>
    %6 = vector.shape_cast %5 : vector<16xf32> to vector<16x1xf32>
    %7 = vector.extract_strided_slice %3 {offsets = [0, 32], sizes = [16, 32], strides = [1, 1]} : vector<16x128xf32> to vector<16x32xf32>
    %cst_3 = arith.constant dense<0.000000e+00> : vector<16xf32>
    %8 = vector.multi_reduction <add>, %7, %cst_3 [1] : vector<16x32xf32> to vector<16xf32>
    %9 = vector.shape_cast %8 : vector<16xf32> to vector<16x1xf32>
    %10 = vector.extract_strided_slice %3 {offsets = [0, 64], sizes = [16, 32], strides = [1, 1]} : vector<16x128xf32> to vector<16x32xf32>
    %cst_4 = arith.constant dense<0.000000e+00> : vector<16xf32>
    %11 = vector.multi_reduction <add>, %10, %cst_4 [1] : vector<16x32xf32> to vector<16xf32>
    %12 = vector.shape_cast %11 : vector<16xf32> to vector<16x1xf32>
    %13 = vector.extract_strided_slice %3 {offsets = [0, 96], sizes = [16, 32], strides = [1, 1]} : vector<16x128xf32> to vector<16x32xf32>
    %cst_5 = arith.constant dense<0.000000e+00> : vector<16xf32>
    %14 = vector.multi_reduction <add>, %13, %cst_5 [1] : vector<16x32xf32> to vector<16xf32>
    %15 = vector.shape_cast %14 : vector<16xf32> to vector<16x1xf32>
    %16 = tpu.concatenate %6, %9, %12, %15 in 1 : vector<16x1xf32>, vector<16x1xf32>, vector<16x1xf32>, vector<16x1xf32> -> vector<16x4xf32>
    %c0_6 = arith.constant 0 : index
    %17 = memref.load %arg3[%c0_6] : memref<1xf32, #tpu.memory_space<smem>>
    %18 = vector.broadcast %17 : f32 to vector<16x4xf32>
    %19 = arith.addf %16, %18 : vector<16x4xf32>
    %c0_7 = arith.constant 0 : index
    %c0_8 = arith.constant 0 : index
    %20 = vector.load %arg4[%c0_7, %c0_8] : memref<16x4xf32, #tpu.memory_space<vmem>>, vector<16x4xf32>
    tpu.vector_store %arg4[%c0_7, %c0_8], %19 {strides = array<i32>} : memref<16x4xf32, #tpu.memory_space<vmem>>, vector<16x4xf32>,
    return
  }
  func.func @transform_0(%arg0: i32) -> (i32, i32) {
    %c0_i32 = arith.constant 0 : i32
    %c0_i32_0 = arith.constant 0 : i32
    return %arg0, %c0_i32 : i32, i32
  }
  func.func @transform_1(%arg0: i32) -> (i32, i32) {
    %c0_i32 = arith.constant 0 : i32
    %c0_i32_0 = arith.constant 0 : i32
    %c0_i32_1 = arith.constant 0 : i32
    return %c0_i32, %c0_i32_0 : i32, i32
  }
  func.func @transform_2(%arg0: i32) -> i32 {
    %c0_i32 = arith.constant 0 : i32
    %c0_i32_0 = arith.constant 0 : i32
    return %c0_i32 : i32
  }
  func.func @transform_3(%arg0: i32) -> (i32, i32) {
    %c0_i32 = arith.constant 0 : i32
    %c0_i32_0 = arith.constant 0 : i32
    return %arg0, %c0_i32 : i32, i32
  }
}

</mosaic_0001>

<bundles_post_ra>
// kernel: tpu_custom_call.1
= control target key start
LH: loop header
LB: loop body
LE: loop exit
PB: predicated region body
PF: predicated region fallthrough
CT: control target
= control target key end

     0   :  { %9 = vsyncpa [#allocation4], 0  ;;  %s137_s12 = smov [#allocation3]   ;;  %s195_s0 = inlined_call_operand.hbm [shape: f32[16,128], index: 0, kind: input, shape index: {}]   ;;  %s196_s1 = inlined_call_operand.vmem [shape: f32[1,128], index: 1, kind: input, shape index: {}]   ;;  %s197_s2 = inlined_call_operand.<no memory space> [shape: f32[1], index: 2, kind: input, shape index: {}]   ;;  %s198_s3 = inlined_call_operand.vmem [shape: f32[16,4], index: 3, kind: output, shape index: {}]  }
   0x1   :  { %s15_s13 = sshll.u32 %s137_s12, 4  ;;  %s113_s16 = scalar_lea.hbm %s195_s0, 256  ;;  %s16_s13 = int_to_ptr.vmem [resolvable:$true] %s15_s13 }
   0x2   :  { %p114_p0 = scmp.ne.s32.totalorder %s195_s0, %s113_s16  ;;  %p117_p1 = scmp.lt.u32.totalorder %s113_s16, %s195_s0 }
   0x4   :  { %p119_p2 = pnand %p117_p1, %p114_p0 }
   0x6   :  { %122 = shalt.err (!%p119_p2)
}
   0x7   :  { %s123_s21 = scalar_lea.vmem %s16_s13, 256  ;;  %p128_p4 = scmp.lt.s32.totalorder %s16_s13, %s16_s13 }
   0x8   :  { %p124_p3 = scmp.ne.s32.totalorder %s16_s13, %s123_s21  ;;  %p129_p5 = scmp.lt.s32.totalorder %s123_s21, %s123_s21 }
   0xa   :  { %p130_p6 = por %p129_p5, %p128_p4 }
   0xc   :  { %p131_p7 = pnand %p130_p6, %p124_p3 }
   0xe   :  { %134 = shalt.err (!%p131_p7)
}
   0xf   :  { %s138_s22 = smov 128   ;;  %s139_s23 = smov 8  }
  0x10   :  { %21 = dma.hbm_to_vmem [thread:$0]  %s195_s0, 256, %s16_s13, [#allocation4], %s138_s22, %s138_s22, %s139_s23  }
  0x11   :  { %135 = dma.done.wait [#allocation4], 256  }
  0x12   :  { %136 = vsyncadd [#allocation4], 4294967040  ;;  %v29_v0 = vld [vmem:[#allocation3] sm:$0xff]  ;;  %v30_v2 = vld [vmem:[#allocation3 + $0x8] sm:$0xff]  ;;  %s140_s28 = smov 96   ;;  %s141_s29 = smov 64   ;;  %v95_v25 = vstv %s197_s2 }
  0x13   :  { %v106_v1 = vld [vmem:[%s196_s1] ss:$0 sm:$0xff]  ;;  %s142_s30 = smov 32   ;;  %vm40_vm0 = vcmask 261120   ;;  %vm85_vm1 = vcmask 7168   ;;  %vm88_vm2 = vcmask 15360  }
  0x14   :  { %v38_v3 = vmul.f32 %v106_v1, %v29_v0  ;;  %v39_v4 = vmul.f32 %v106_v1, %v30_v2  ;;  %vm91_vm3 = vcmask 23552   ;;  %vm98_vm4 = vcmask 31744  }
  0x16   :  { %49 = vrot.lane.b32.xlu0 %v38_v3, %s140_s28  ;;  %61 = vrot.lane.b32.xlu1 %v38_v3, %s141_s29  ;;  %v41_v5 = vsel %vm40_vm0, %v38_v3, 0.0  ;;  %v44_v6 = vsel %vm40_vm0, %v39_v4, 0.0 }
  0x1a   :  { %51 = vrot.lane.b32.xlu0 %v39_v4, %s140_s28  ;;  %63 = vrot.lane.b32.xlu1 %v39_v4, %s141_s29 }
  0x1e   :  { %73 = vrot.lane.b32.xlu0 %v38_v3, %s142_s30  ;;  %75 = vrot.lane.b32.xlu1 %v39_v4, %s142_s30 }
  0x3d   :  { %42 = vadd.xlane.f32.xlu0 %v41_v5 }
  0x42   :  { %45 = vadd.xlane.f32.xlu1 %v44_v6 }
  0x88   :  { %v50_v7 = vpop.permute.xlu0 %49  ;;  %v62_v8 = vpop.permute.xlu1 %61 }
  0x89   :  { %v55_v9 = vsel %vm40_vm0, %v50_v7, 0.0  ;;  %v67_v10 = vsel %vm40_vm0, %v62_v8, 0.0 }
  0x8a   :  { %56 = vadd.xlane.f32.xlu0 %v55_v9  ;;  %68 = vadd.xlane.f32.xlu1 %v67_v10 }
  0x8c   :  { %v52_v11 = vpop.permute.xlu0 %51  ;;  %v64_v12 = vpop.permute.xlu1 %63 }
  0x8d   :  { %v58_v13 = vsel %vm40_vm0, %v52_v11, 0.0  ;;  %v70_v14 = vsel %vm40_vm0, %v64_v12, 0.0 }
  0x8e   :  { %59 = vadd.xlane.f32.xlu0 %v58_v13 }
  0x90   :  { %v74_v15 = vpop.permute.xlu0 %73  ;;  %v76_v16 = vpop.permute.xlu1 %75 }
  0x91   :  { %v79_v17 = vsel %vm40_vm0, %v74_v15, 0.0  ;;  %v82_v18 = vsel %vm40_vm0, %v76_v16, 0.0 }
  0x92   :  { %80 = vadd.xlane.f32.xlu1 %v79_v17  ;;  %71 = vadd.xlane.f32.xlu0 %v70_v14 }
  0x96   :  { %83 = vadd.xlane.f32.xlu0 %v82_v18 }
  0xca   :  { %v43_v19 = vpop.xlane.xlu0 %42 }
  0xcf   :  { %v46_v20 = vpop.xlane.xlu1 %45 }
 0x117   :  { %v57_v21 = vpop.xlane.xlu0 %56  ;;  %v69_v22 = vpop.xlane.xlu1 %68 }
 0x118   :  { %v86_v24 = vsel %vm85_vm1, %v43_v19, %v57_v21 }
 0x119   :  { %v89_v26 = vsel %vm88_vm2, %v86_v24, %v69_v22 }
 0x11b   :  { %v60_v23 = vpop.xlane.xlu0 %59 }
 0x11c   :  { %v87_v31 = vsel %vm85_vm1, %v46_v20, %v60_v23 }
 0x11f   :  { %v81_v27 = vpop.xlane.xlu1 %80  ;;  %v72_v28 = vpop.xlane.xlu0 %71 }
 0x120   :  { %v92_v29 = vsel %vm91_vm3, %v89_v26, %v81_v27  ;;  %v90_v32 = vsel %vm88_vm2, %v87_v31, %v72_v28 }
 0x121   :  { %v96_v30 = vadd.f32 %v95_v25, %v92_v29 }
 0x123   :  { %99 = vst.msk [vmem:[%s198_s3] sm:$0xff] %vm98_vm4, %v96_v30  ;;  %v84_v33 = vpop.xlane.xlu0 %83 }
 0x124   :  { %v93_v34 = vsel %vm91_vm3, %v90_v32, %v84_v33 }
 0x125   :  { %v97_v35 = vadd.f32 %v95_v25, %v93_v34 }
 0x127   :  { %100 = vst.msk [vmem:[%s198_s3 + $0x8] sm:$0xff] %vm98_vm4, %v97_v35 }
 0x128   :  { %105 = vsyncpa [#allocation4], 1 }

</bundles_post_ra>
